<compile_context>
chip_gen: v6e
topology: v6e:2x2x1
jax: 0.10.0
libtpu: 0.0.40
codegen_flags: <defaults>
</compile_context>

<pallas_src>
import functools

import jax
import jax.numpy as jnp
from jax import lax
from jax.experimental import pallas as pl
from jax.experimental.pallas import tpu as pltpu


def _round_up(x, m):
    return ((x + m - 1) // m) * m


def moe_kernel(x_ref, wf_ref, bf_ref, expand_ref, w2_ref, out_ref, *, eh_padded):
    """Fused gating + all experts + gate-weighted combine for one batch tile."""
    # x arrives f32; cast to bf16 in-register (no separate HBM bf16 copy of x).
    x = x_ref[...].astype(jnp.bfloat16)                     # (TB, D) bf16

    # One MXU call: every expert's first layer AND the gating logits.
    #   columns [0, EHp)       -> expert hidden pre-activations (zero-padded)
    #   columns [EHp, EHp + E) -> gating logits
    z = jnp.dot(x, wf_ref[...], preferred_element_type=jnp.float32)
    z = z + bf_ref[...]                                     # f32 (TB, EHp + E)

    # Softmax over experts (tile-aligned slice since EHp % 128 == 0).
    logits = z[:, eh_padded:]                                # f32 (TB, E)
    m = jnp.max(logits, axis=-1, keepdims=True)
    p = jnp.exp(logits - m)
    gate = p * pl.reciprocal(jnp.sum(p, axis=-1, keepdims=True), approx=True)

    # Layout-preserving gate expansion: (TB,E) @ (E, EHp+E) block-ones/identity
    # matrix rides the MXU; avoids the (TB,E,H) reshape relayout.
    mult = jnp.dot(gate, expand_ref[...], preferred_element_type=jnp.float32)

    # base = relu(hidden) on expert columns, 1.0 on the trailing gate columns
    # so the combine matmul also applies the gate-weighted second-layer bias.
    col = lax.broadcasted_iota(jnp.int32, z.shape, 1)
    base = jnp.where(col < eh_padded, jnp.maximum(z, 0.0), 1.0)

    combined = base * mult                                   # f32 (TB, EHp + E)

    # Second layer + expert-sum + bias as ONE stacked matmul:
    #   out = sum_e gate_e * (relu(x@W1_e + b1_e) @ W2_e + b2_e)
    out = jnp.dot(combined.astype(w2_ref.dtype), w2_ref[...],
                  preferred_element_type=jnp.float32)
    out_ref[...] = out.astype(out_ref.dtype)


def pack_params(params):
    """One-time weight packing. Call at parameter-load time, NOT per forward."""
    E, D, H = params["w1"].shape
    A = params["w2"].shape[-1]
    EH = E * H
    EHp = _round_up(EH, 128)     # keep hidden/logits split on a 128-lane boundary
    pad = EHp - EH

    # Fused first layer: [W1 (all experts) | zero pad | Wg]  -> (D, EHp + E)
    w1_flat = jnp.transpose(params["w1"], (1, 0, 2)).reshape(D, EH)
    w_fused = jnp.concatenate(
        [w1_flat, jnp.zeros((D, pad), jnp.float32), params["wg"]],
        axis=1).astype(jnp.bfloat16)
    b_fused = jnp.concatenate(
        [params["b1"].reshape(1, EH), jnp.zeros((1, pad), jnp.float32),
         params["bg"]], axis=1).astype(jnp.float32)           # (1, EHp + E)

    # Stacked second layer with per-expert bias folded in as extra rows:
    #   (EHp + E, A) = [W2_stacked ; zero pad ; b2]
    w2_stk = jnp.concatenate(
        [params["w2"].reshape(EH, A), jnp.zeros((pad, A), jnp.float32),
         params["b2"].reshape(E, A)], axis=0).astype(jnp.bfloat16)

    # (E, EHp + E) gate-expansion: ones over each expert's hidden block,
    # identity over the trailing gate/bias columns, zeros over padding.
    eye = jnp.eye(E, dtype=jnp.float32)
    expand = jnp.concatenate(
        [jnp.repeat(eye, H, axis=1), jnp.zeros((E, pad), jnp.float32), eye],
        axis=1)

    return {"w_fused": w_fused, "b_fused": b_fused,
            "w2_stacked": w2_stk, "expand": expand}


def policy_moe_forward(data, packed, *, batch_tile=2048, min_parallel_steps=2):
    """data: (B, channel, input_dim) f32, packed: pack_params(...) -> (B, A) f32."""
    B = data.shape[0]
    D = packed["w_fused"].shape[0]
    total = packed["w_fused"].shape[1]                       # EHp + E
    E = packed["expand"].shape[0]
    EHp = total - E
    A = packed["w2_stacked"].shape[1]

    x_flat = data.reshape(B, D)                              # stays f32

    # Batch tiling: one "parallel" grid axis. For large B aim for at least
    # `min_parallel_steps` grid steps (v7x has 2 TensorCores); small B runs as
    # a single full tile. Padded tail rows of a partial last tile run softmax
    # on padding but their outputs are discarded (benign).
    if B < 16:
        TB = B
    else:
        TB = min(batch_tile, _round_up(pl.cdiv(B, min_parallel_steps), 8))
    grid = (pl.cdiv(B, TB),)

    flops = 2 * B * total * (D + E + A)
    bytes_accessed = (x_flat.size * 4 + packed["w_fused"].size * 2
                      + packed["b_fused"].size * 4 + packed["expand"].size * 4
                      + packed["w2_stacked"].size * 2 + B * A * 4)
    cost = pl.CostEstimate(flops=flops, transcendentals=B * (E + 1),
                           bytes_accessed=bytes_accessed)

    kernel = functools.partial(moe_kernel, eh_padded=EHp)

    return pl.pallas_call(
        kernel,
        out_shape=jax.ShapeDtypeStruct((B, A), jnp.float32),
        grid_spec=pltpu.PrefetchScalarGridSpec(
            num_scalar_prefetch=0,
            grid=grid,
            in_specs=[
                pl.BlockSpec((TB, D), lambda b: (b, 0)),        # x (batch tile)
                pl.BlockSpec((D, total), lambda b: (0, 0)),     # fused [W1|pad|Wg]
                pl.BlockSpec((1, total), lambda b: (0, 0)),     # fused [b1|pad|bg]
                pl.BlockSpec((E, total), lambda b: (0, 0)),     # gate expansion
                pl.BlockSpec((total, A), lambda b: (0, 0)),     # stacked [W2; b2]
            ],
            out_specs=pl.BlockSpec((TB, A), lambda b: (b, 0)),
        ),
        compiler_params=pltpu.CompilerParams(
            dimension_semantics=("parallel",)),
        cost_estimate=cost,
    )(x_flat, packed["w_fused"], packed["b_fused"],
      packed["expand"], packed["w2_stacked"])


def make_params(key, channel, input_dim, action_size, num_experts, hidden):
    d_flat = channel * input_dim
    ks = jax.random.split(key, 6)
    scale = 0.1
    return {
        "wg": scale * jax.random.normal(ks[0], (d_flat, num_experts), jnp.float32),
        "bg": scale * jax.random.normal(ks[1], (1, num_experts), jnp.float32),
        "w1": scale * jax.random.normal(ks[2], (num_experts, d_flat, hidden), jnp.float32),
        "b1": scale * jax.random.normal(ks[3], (num_experts, 1, hidden), jnp.float32),
        "w2": scale * jax.random.normal(ks[4], (num_experts, hidden, action_size), jnp.float32),
        "b2": scale * jax.random.normal(ks[5], (num_experts, 1, action_size), jnp.float32),
    }


def reference_forward(data, params):
    """Plain-JAX f32 reference mirroring the PyTorch forward semantics."""
    B = data.shape[0]
    x_flat = data.reshape(B, -1)
    gate = jax.nn.softmax(x_flat @ params["wg"] + params["bg"][0], axis=-1)  # (B, E)
    E = params["w1"].shape[0]
    outs = []
    for e in range(E):
        h = jnp.maximum(x_flat @ params["w1"][e] + params["b1"][e, 0], 0.0)
        outs.append(h @ params["w2"][e] + params["b2"][e, 0])
    outs = jnp.stack(outs, axis=1)                        # (B, E, A)
    return jnp.sum(gate[..., None] * outs, axis=1)        # (B, A)


if __name__ == "__main__":
    # Shapes consistent with the module's forward: data is (batch, channel, input_dim).
    channel, input_dim = 4, 16
    action_size, num_experts, hidden = 8, 4, 32

    key = jax.random.PRNGKey(0)
    k_x, k_p, k_x2 = jax.random.split(key, 3)
    params = make_params(k_p, channel, input_dim, action_size, num_experts, hidden)
    packed = pack_params(params)          # one-time packing (outside the forward)

    moe_fn = jax.jit(policy_moe_forward)

    # Small batch (single grid step).
    batch = 2
    data = jax.random.normal(k_x, (batch, channel, input_dim), jnp.float32)
    out = jax.block_until_ready(moe_fn(data, packed))
    ref = reference_forward(data, params)
    assert out.shape == (batch, action_size)
    assert jnp.allclose(out, ref, atol=2e-2, rtol=2e-2), (
        f"mismatch vs JAX reference, max abs err = {jnp.max(jnp.abs(out - ref))}")

    # Larger batch: exercises >=2 parallel grid steps and a partial last tile.
    batch2 = 40
    data2 = jax.random.normal(k_x2, (batch2, channel, input_dim), jnp.float32)
    out2 = jax.block_until_ready(moe_fn(data2, packed))
    ref2 = reference_forward(data2, params)
    assert out2.shape == (batch2, action_size)
    assert jnp.allclose(out2, ref2, atol=2e-2, rtol=2e-2), (
        f"mismatch vs JAX reference, max abs err = {jnp.max(jnp.abs(out2 - ref2))}")

    print("KERNEL_OK")
</pallas_src>

<mosaic_0001>
module attributes {stable_mosaic.version = 11 : i64} {
  func.func @moe_kernel(%arg0: i32, %arg1: memref<2x64xf32, #tpu.memory_space<vmem>>, %arg2: memref<64x132xbf16, #tpu.memory_space<vmem>>, %arg3: memref<1x132xf32, #tpu.memory_space<vmem>>, %arg4: memref<4x132xf32, #tpu.memory_space<vmem>>, %arg5: memref<132x8xbf16, #tpu.memory_space<vmem>>, %arg6: memref<2x8xf32, #tpu.memory_space<vmem>>) attributes {dimension_semantics = [#tpu.dimension_semantics<parallel>], iteration_bounds = array<i64: 1>, scalar_prefetch = 0 : i64, scratch_operands = 0 : i64, tpu.core_type = #tpu.core_type<tc>, window_params = [{transform_indices = @transform_0, window_bounds = array<i64: 2, 64>}, {pipeline_mode = #tpu.pipeline_mode<synchronous>, transform_indices = @transform_1, window_bounds = array<i64: 64, 132>}, {pipeline_mode = #tpu.pipeline_mode<synchronous>, transform_indices = @transform_2, window_bounds = array<i64: 1, 132>}, {pipeline_mode = #tpu.pipeline_mode<synchronous>, transform_indices = @transform_3, window_bounds = array<i64: 4, 132>}, {pipeline_mode = #tpu.pipeline_mode<synchronous>, transform_indices = @transform_4, window_bounds = array<i64: 132, 8>}, {transform_indices = @transform_5, window_bounds = array<i64: 2, 8>}]} {
    %c0 = arith.constant 0 : index
    %c0_0 = arith.constant 0 : index
    %0 = vector.load %arg1[%c0, %c0_0] : memref<2x64xf32, #tpu.memory_space<vmem>>, vector<2x64xf32>
    %1 = arith.truncf %0 : vector<2x64xf32> to vector<2x64xbf16>
    %c0_1 = arith.constant 0 : index
    %c0_2 = arith.constant 0 : index
    %2 = vector.load %arg2[%c0_1, %c0_2] : memref<64x132xbf16, #tpu.memory_space<vmem>>, vector<64x132xbf16>
    %cst = arith.constant dense<0.000000e+00> : vector<2x132xf32>
    %3 = tpu.matmul %1, %2, %cst {dimension_numbers = #tpu.dot_dimension_numbers<[1], [0], [0], [1], [0, 0, 1, 1], [], []>} : vector<2x64xbf16>, vector<64x132xbf16>, vector<2x132xf32> -> vector<2x132xf32>
    %c0_3 = arith.constant 0 : index
    %c0_4 = arith.constant 0 : index
    %4 = vector.load %arg3[%c0_3, %c0_4] : memref<1x132xf32, #tpu.memory_space<vmem>>, vector<1x132xf32>
    %5 = vector.broadcast %4 : vector<1x132xf32> to vector<2x132xf32>
    %6 = arith.addf %3, %5 : vector<2x132xf32>
    %7 = vector.extract_strided_slice %6 {offsets = [0, 128], sizes = [2, 4], strides = [1, 1]} : vector<2x132xf32> to vector<2x4xf32>
    %cst_5 = arith.constant dense<0xFF800000> : vector<2xf32>
    %8 = vector.multi_reduction <maximumf>, %7, %cst_5 [1] : vector<2x4xf32> to vector<2xf32>
    %9 = vector.shape_cast %8 : vector<2xf32> to vector<2x1xf32>
    %10 = vector.broadcast %9 : vector<2x1xf32> to vector<2x4xf32>
    %11 = arith.subf %7, %10 : vector<2x4xf32>
    %12 = math.exp %11 : vector<2x4xf32>
    %cst_6 = arith.constant dense<0.000000e+00> : vector<2xf32>
    %13 = vector.multi_reduction <add>, %12, %cst_6 [1] : vector<2x4xf32> to vector<2xf32>
    %14 = vector.shape_cast %13 : vector<2xf32> to vector<2x1xf32>
    %15 = tpu.reciprocal %14 {approx = true} : vector<2x1xf32> -> vector<2x1xf32>
    %16 = vector.broadcast %15 : vector<2x1xf32> to vector<2x4xf32>
    %17 = arith.mulf %12, %16 : vector<2x4xf32>
    %c0_7 = arith.constant 0 : index
    %c0_8 = arith.constant 0 : index
    %18 = vector.load %arg4[%c0_7, %c0_8] : memref<4x132xf32, #tpu.memory_space<vmem>>, vector<4x132xf32>
    %cst_9 = arith.constant dense<0.000000e+00> : vector<2x132xf32>
    %19 = tpu.matmul %17, %18, %cst_9 {dimension_numbers = #tpu.dot_dimension_numbers<[1], [0], [0], [1], [0, 0, 1, 1], [], []>} : vector<2x4xf32>, vector<4x132xf32>, vector<2x132xf32> -> vector<2x132xf32>
    %20 = tpu.iota {dimensions = array<i32: 1>} : vector<2x132xi32>
    %c128_i32 = arith.constant 128 : i32
    %21 = vector.broadcast %c128_i32 : i32 to vector<2x132xi32>
    %22 = arith.cmpi slt, %20, %21 : vector<2x132xi32>
    %cst_10 = arith.constant 0.000000e+00 : f32
    %23 = vector.broadcast %cst_10 : f32 to vector<2x132xf32>
    %24 = arith.maximumf %6, %23 : vector<2x132xf32>
    %cst_11 = arith.constant 1.000000e+00 : f32
    %25 = vector.broadcast %cst_11 : f32 to vector<2x132xf32>
    %26 = arith.select %22, %24, %25 : vector<2x132xi1>, vector<2x132xf32>
    %27 = arith.mulf %26, %19 : vector<2x132xf32>
    %28 = arith.truncf %27 : vector<2x132xf32> to vector<2x132xbf16>
    %c0_12 = arith.constant 0 : index
    %c0_13 = arith.constant 0 : index
    %29 = vector.load %arg5[%c0_12, %c0_13] : memref<132x8xbf16, #tpu.memory_space<vmem>>, vector<132x8xbf16>
    %cst_14 = arith.constant dense<0.000000e+00> : vector<2x8xf32>
    %30 = tpu.matmul %28, %29, %cst_14 {dimension_numbers = #tpu.dot_dimension_numbers<[1], [0], [0], [1], [0, 0, 1, 1], [], []>} : vector<2x132xbf16>, vector<132x8xbf16>, vector<2x8xf32> -> vector<2x8xf32>
    %c0_15 = arith.constant 0 : index
    %c0_16 = arith.constant 0 : index
    %31 = vector.load %arg6[%c0_15, %c0_16] : memref<2x8xf32, #tpu.memory_space<vmem>>, vector<2x8xf32>
    tpu.vector_store %arg6[%c0_15, %c0_16], %30 {strides = array<i32>} : memref<2x8xf32, #tpu.memory_space<vmem>>, vector<2x8xf32>,
    return
  }
  func.func @transform_0(%arg0: i32) -> (i32, i32) {
    %c0_i32 = arith.constant 0 : i32
    %c0_i32_0 = arith.constant 0 : i32
    return %arg0, %c0_i32 : i32, i32
  }
  func.func @transform_1(%arg0: i32) -> (i32, i32) {
    %c0_i32 = arith.constant 0 : i32
    %c0_i32_0 = arith.constant 0 : i32
    %c0_i32_1 = arith.constant 0 : i32
    return %c0_i32, %c0_i32_0 : i32, i32
  }
  func.func @transform_2(%arg0: i32) -> (i32, i32) {
    %c0_i32 = arith.constant 0 : i32
    %c0_i32_0 = arith.constant 0 : i32
    %c0_i32_1 = arith.constant 0 : i32
    return %c0_i32, %c0_i32_0 : i32, i32
  }
  func.func @transform_3(%arg0: i32) -> (i32, i32) {
    %c0_i32 = arith.constant 0 : i32
    %c0_i32_0 = arith.constant 0 : i32
    %c0_i32_1 = arith.constant 0 : i32
    return %c0_i32, %c0_i32_0 : i32, i32
  }
  func.func @transform_4(%arg0: i32) -> (i32, i32) {
    %c0_i32 = arith.constant 0 : i32
    %c0_i32_0 = arith.constant 0 : i32
    %c0_i32_1 = arith.constant 0 : i32
    return %c0_i32, %c0_i32_0 : i32, i32
  }
  func.func @transform_5(%arg0: i32) -> (i32, i32) {
    %c0_i32 = arith.constant 0 : i32
    %c0_i32_0 = arith.constant 0 : i32
    return %arg0, %c0_i32 : i32, i32
  }
}

</mosaic_0001>

<bundles_post_ra>
// kernel: policy_moe_forward.1
= control target key start
LH: loop header
LB: loop body
LE: loop exit
PB: predicated region body
PF: predicated region fallthrough
CT: control target
= control target key end

     0   :  { %v441_v2 = vmov 0   ;;  %s549_s0 = inlined_call_operand.vmem [shape: f32[2,64], index: 0, kind: input, shape index: {}]   ;;  %s550_s1 = inlined_call_operand.vmem [shape: bf16[64,132], index: 1, kind: input, shape index: {}]   ;;  %s551_s2 = inlined_call_operand.vmem [shape: f32[1,132], index: 2, kind: input, shape index: {}]   ;;  %s552_s3 = inlined_call_operand.vmem [shape: f32[4,132], index: 3, kind: input, shape index: {}]   ;;  %s553_s4 = inlined_call_operand.vmem [shape: bf16[132,8], index: 4, kind: input, shape index: {}]   ;;  %s554_s5 = inlined_call_operand.hbm [shape: f32[2,8], index: 5, kind: output, shape index: {}]  }
   0x1   :  { %v393_v0 = vld [vmem:[%s550_s1 + $0x34] ss:$8 sps:$4 sm:$0xff]   ;;  %v395_v1 = vld [vmem:[%s550_s1 + $0x30] ss:$8 sps:$4 sm:$0xff]   ;;  %120 = vmatprep.mubr.bf16.mxu0 %v441_v2  ;;  %312 = vmatprep.subr.bf16.mxu1 %v441_v2  ;;  %v396_v3 = vld [vmem:[%s550_s1 + $0x24] ss:$8 sps:$4 sm:$0xff]  }
   0x2   :  { %96 = vmatprep.subr.bf16.mxu0 %v393_v0  ;;  %v398_v4 = vld [vmem:[%s550_s1 + $0x20] ss:$8 sps:$4 sm:$0xff]   ;;  %v399_v5 = vld [vmem:[%s550_s1 + $0x14] ss:$8 sps:$4 sm:$0xff]   ;;  %v401_v6 = vld [vmem:[%s550_s1 + $0x10] ss:$8 sps:$4 sm:$0xff]  }
   0x3   :  { %97 = vmatpush1.bf16.msra.mxu0 %v395_v1  ;;  %v402_v7 = vld [vmem:[%s550_s1 + $0x4] ss:$8 sps:$4 sm:$0xff]   ;;  %v404_v8 = vld [vmem:[%s550_s1] ss:$8 sps:$4 sm:$0xff]  }
   0x4   :  { %98 = vmatprep.subr.bf16.mxu0 %v396_v3  ;;  %v22_v9 = vld [vmem:[%s549_s0] sm:$0x3] }
   0x7   :  { %99 = vmatpush1.bf16.msra.mxu0 %v398_v4 }
   0x8   :  { %100 = vmatprep.subr.bf16.mxu0 %v399_v5 }
   0xb   :  { %101 = vmatpush1.bf16.msra.mxu0 %v401_v6 }
   0xc   :  { %10 = vsyncpa [#allocation3], 0  ;;  %102 = vmatprep.subr.bf16.mxu0 %v402_v7  ;;  %v23_v10 = vpack.c.bf16 %v22_v9, %v22_v9  ;;  %vm84_vm0 = vcmask 523264   ;;  %v34_v11 = vlaneseq  ;;  %v32_v14 = vld [vmem:[%s551_s2] sm:$0x3]  ;;  %vm129_vm1 = vcmask 25600  }
   0xd   :  { %v141_v27 = vld [vmem:[%s552_s3] sm:$0xff]  ;;  %vm148_vm2 = vcmask 1043456   ;;  %v442_v29 = vmov 0.0   ;;  %v406_v30 = vld [vmem:[%s553_s4 + $0x38] sm:$0xff]   ;;  %v407_v31 = vld [vmem:[%s553_s4 + $0x30] sm:$0xff]   ;;  %vm144_vm3 = vcmask 31744  }
   0xe   :  { %v35_v12 = vshrl.u32 %v34_v11, 7  ;;  %v143_v28 = vcombine.high %v141_v27, %v141_v27  ;;  %313 = vmatpush1.bf16.msra.mxu1 %v406_v30  ;;  %v408_v32 = vld [vmem:[%s553_s4 + $0x28] sm:$0xff]   ;;  %v409_v33 = vld [vmem:[%s553_s4 + $0x20] sm:$0xff]   ;;  %v410_v34 = vld [vmem:[%s553_s4 + $0x18] sm:$0xff]   ;;  %vm308_vm4 = vcmask 1041408   ;;  %s443_s29 = smov [#allocation2]  }
   0xf   :  { %103 = vmatpush1.bf16.msra.mxu0 %v404_v8  ;;  %314 = vmatprep.subr.bf16.mxu1 %v441_v2  ;;  %v411_v35 = vld [vmem:[%s553_s4 + $0x10] sm:$0xff]   ;;  %v412_v36 = vld [vmem:[%s553_s4 + $0x8] sm:$0xff]   ;;  %v413_v37 = vld [vmem:[%s553_s4] sm:$0xff]   ;;  %s360_s30 = sshll.u32 %s443_s29, 4  ;;  %vm352_vm5 = vcmask 58368   ;;  %s361_s30 = int_to_ptr.vmem [resolvable:$true] %s360_s30 }
  0x10   :  { %v40_v13 = vsub.s32 1, %v35_v12  ;;  %377 = vmatprep.subr.msk.mxu0 %vm148_vm2, %v143_v28  ;;  %v414_v41 = vld [vmem:[%s553_s4 + $0x40] ss:$0 sps:$4 sm:$0x33]   ;;  %v36_v43 = vsub.s32 0, %v35_v12  ;;  %s419_s4 = scalar_lea.vmem %s361_s30, 32  ;;  %p424_p1 = scmp.lt.s32.totalorder %s361_s30, %s361_s30 }
  0x11   :  { %v310_v42 = vsel %vm308_vm4, %v414_v41, 0  ;;  %p420_p0 = scmp.ne.s32.totalorder %s361_s30, %s419_s4  ;;  %p425_p2 = scmp.lt.s32.totalorder %s419_s4, %s419_s4 }
  0x12   :  { %376 = vmatmul.mubr.msk.bf16.vlgmr.msra.gmra.mxu0 %vm84_vm0, %v23_v10  ;;  %v41_v15 = vrot.slane %v32_v14, %v40_v13  ;;  %315 = vmatpush1.bf16.msra.mxu1 %v407_v31  ;;  %v37_v44 = vrot.slane %v32_v14, %v36_v43 }
  0x13   :  { %217 = vmatprep.mubr.f32.mxu0 %v442_v29  ;;  %378 = vmatpush1.msk.msra.mxu0 %vm148_vm2, %v141_v27  ;;  %p426_p3 = por %p425_p2, %p424_p1 }
  0x14   :  { %316 = vmatprep.subr.bf16.mxu1 %v441_v2 }
  0x15   :  { %p427_p4 = pnand %p426_p3, %p420_p0 }
  0x16   :  { %317 = vmatpush1.bf16.msra.mxu1 %v408_v32 }
  0x17   :  { %318 = vmatprep.subr.bf16.mxu1 %v441_v2 }
  0x1a   :  { %319 = vmatpush1.bf16.msra.mxu1 %v409_v33 }
  0x1b   :  { %320 = vmatprep.subr.bf16.mxu1 %v441_v2 }
  0x1e   :  { %321 = vmatpush1.bf16.msra.mxu1 %v410_v34 }
  0x1f   :  { %322 = vmatprep.subr.bf16.mxu1 %v441_v2 }
  0x22   :  { %323 = vmatpush1.bf16.msra.mxu1 %v411_v35 }
  0x23   :  { %324 = vmatprep.subr.bf16.mxu1 %v441_v2 }
  0x26   :  { %325 = vmatpush1.bf16.msra.mxu1 %v412_v36 }
  0x27   :  { %326 = vmatprep.subr.bf16.mxu1 %v441_v2 }
  0x2a   :  { %327 = vmatpush1.bf16.msra.mxu1 %v413_v37 }
  0x2b   :  { %342 = vmatprep.subr.bf16.mxu1 %v441_v2 }
  0x2e   :  { %343 = vmatpush2.bf16.msra.mxu1 %v310_v42 }
  0xd2   :  { %v122_v16 = vpop.f32.mrf.mxu0 }
  0xd3   :  { %v123_v45 = vadd.f32 %v122_v16, %v37_v44 }
  0xd4   :  { %v124_v17 = vpop.f32.mrf.mxu0 }
  0xd5   :  { %v125_v18 = vadd.f32 %v124_v17, %v41_v15  ;;  %v229_v46 = vmax.f32 %v123_v45, 0.0 }
  0xd6   :  { %v126_v19 = vpop.f32.mrf.mxu0 }
  0xd7   :  { %v130_v20 = vsel %vm129_vm1, %v125_v18, -inf }
  0xd8   :  { %v127_v21 = vpop.f32.mrf.mxu0  ;;  %131 = vmax.xlane.f32.xlu0 %v130_v20 }
 0x161   :  { %v132_v22 = vpop.xlane.xlu0 %131 }
 0x162   :  { %v133_v23 = vsub.f32 %v125_v18, %v132_v22 }
 0x164   :  { %v134_v24 = vmul.f32 1.442695, %v133_v23 }
 0x166   :  { %415 = vpow2.f32 %v134_v24 }
 0x173   :  { %v416_v25 = vpop.eup %415 }
 0x174   :  { %v136_v26 = vsel %vm129_vm1, %v416_v25, 0.0 }
 0x175   :  { %137 = vadd.xlane.f32.xlu0 %v136_v26 }
 0x1fe   :  { %v138_v38 = vpop.xlane.xlu0 %137 }
 0x1ff   :  { %417 = vrcp.f32 %v138_v38 }
 0x20c   :  { %v418_v39 = vpop.eup %417 }
 0x20d   :  { %v140_v40 = vmul.f32 %v418_v39, %v416_v25 }
 0x20f   :  { %379 = vmatmul.mubr.msk.f32.vlgmr.msra.gmra.mxu0 %vm144_vm3, %v140_v40 }
 0x2cf   :  { %v219_v47 = vpop.f32.mrf.mxu0 }
 0x2d0   :  { %v233_v48 = vmul.f32 %v229_v46, %v219_v47 }
 0x2d1   :  { %v221_v49 = vpop.f32.mrf.mxu0 }
 0x2d2   :  { %v235_v50 = vpack.c.bf16 %v233_v48, %v233_v48  ;;  %v236_v51 = vpack.c.bf16 %v221_v49, %v221_v49 }
 0x2d4   :  { %389 = vmatprep.mubr.msk.bf16.mxu1 %vm144_vm3, %v236_v51 }
 0x2d5   :  { %345 = vmatmul.mubr.bf16.vlgmr.msra.gmra.mxu1 %v235_v50 }
 0x395   :  { %v346_v52 = vpop.f32.mrf.mxu1 }
 0x396   :  { %353 = vst.msk [vmem:[#allocation2] sm:$0x3] %vm352_vm5, %v346_v52 }
 0x397   :  { %v348_v53 = vpop.f32.mrf.mxu1 }
 0x398   :  { %430 = shalt.err (!%p427_p4)
}
 0x399   :  { %363 = dma.vmem_to_hbm [thread:$0]  %s361_s30, 32, %s554_s5, [#allocation3]   ;;  %v349_v54 = vpop.f32.mrf.mxu1 }
 0x39b   :  { %v350_v55 = vpop.f32.mrf.mxu1 }
 0x39c   :  { %439 = dma.done.wait [#allocation3], 32  }
 0x39d   :  { %440 = vsyncadd [#allocation3], 4294967264 }
 0x39e   :  { %367 = vsyncpa [#allocation3], 1 }

</bundles_post_ra>
